<compile_context>
chip_gen: v5e
topology: v5e:2x2
jax: 0.10.0
libtpu: 0.0.40
codegen_flags: <defaults>
</compile_context>

<pallas_src>
import functools

import jax
import jax.numpy as jnp
from jax.experimental import pallas as pl
from jax.experimental.pallas import tpu as pltpu

_INSTANCE_EPS = 1e-5   # hardcoded inside Entropy() in the PyTorch reference


def _device_kind():
    try:
        return jax.devices()[0].device_kind.lower()
    except Exception:
        return ""


def _tuning_for_device():
    """Generation-aware core count, tile byte budget, and scoped-VMEM limit."""
    kind = _device_kind()
    if "v7" in kind:
        # 2 TCs/chip but only 64 MiB physical VMEM: modest tiles, explicit budget.
        return dict(num_cores=2, tile_bytes=4 << 20, vmem_limit=48 << 20)
    if "v6" in kind:
        # 1 TC, 128 MiB VMEM, 1.4 TB/s HBM: larger tiles amortize per-step overhead.
        return dict(num_cores=1, tile_bytes=8 << 20, vmem_limit=64 << 20)
    if "v5" in kind:
        # v5e default scoped VMEM is small; keep tiles ~4 MiB and raise the limit.
        return dict(num_cores=1, tile_bytes=4 << 20, vmem_limit=48 << 20)
    # Unknown device: conservative settings valid on every generation.
    return dict(num_cores=1, tile_bytes=4 << 20, vmem_limit=48 << 20)


def _choose_row_tile(batch, num_classes, itemsize, tile_bytes):
    """Largest multiple-of-8 row count with one logits tile <= tile_bytes."""
    if batch <= 8:
        return batch                        # full dim is always a legal block shape
    per_row = max(1, num_classes * itemsize)
    max_rows = max(8, (tile_bytes // per_row) // 8 * 8)
    return max(8, min(max_rows, (batch // 8) * 8))


def _im_partials_kernel(x_ref, psum_ref, ent_ref, *,
                        batch, tiles_per_core, total_tiles, ragged, gate_padded):
    c = pl.program_id(0)            # "core" (parallel) axis
    i = pl.program_id(1)            # reduction axis over row tiles
    tb = x_ref.shape[0]
    t = c * tiles_per_core + i      # global tile index
    last = total_tiles - 1

    # Init resident per-core accumulators at the start of each core's reduction.
    @pl.when(i == 0)
    def _():
        psum_ref[...] = jnp.zeros_like(psum_ref)
        ent_ref[...] = jnp.zeros_like(ent_ref)

    def accumulate(mask_rows):
        x = x_ref[...].astype(jnp.float32)
        # TODO(synk): with bf16 logits on v6e/v7x, a bf16 exp/log (EUP) path would
        #             ~halve transcendental time; kept f32 for exact reference match.
        if mask_rows:
            rows = t * tb + jax.lax.broadcasted_iota(jnp.int32, (tb, 1), 0)
            valid = rows < batch                           # (tb, 1)
            x = jnp.where(valid, x, 0.0)                   # sanitize OOB-padded rows

        # Softmax over classes (dim=1); all intermediates 2-D and lane-dense.
        m = jnp.max(x, axis=1, keepdims=True)
        e = jnp.exp(x - m)
        denom = jnp.sum(e, axis=1, keepdims=True)
        p = e * pl.reciprocal(denom, approx=False)         # (tb, C)

        # Per-row (instance) entropy with the hardcoded 1e-5 epsilon.
        ent_row = -jnp.sum(p * jnp.log(p + _INSTANCE_EPS), axis=1, keepdims=True)

        if mask_rows:
            vf = valid.astype(jnp.float32)                 # (tb, 1)
            p = p * vf
            ent_row = ent_row * vf

        psum_ref[...] += jnp.sum(p, axis=0, keepdims=True)        # (1, C)
        ent_ref[...] += jnp.sum(ent_row, axis=0, keepdims=True)   # (1, 1)

    if ragged:
        # Only the globally-last tile is ragged; full tiles take the unmasked
        # fast path, and fully-padded grid cells fall through both branches.
        @pl.when(t < last)
        def _():
            accumulate(mask_rows=False)

        @pl.when(t == last)
        def _():
            accumulate(mask_rows=True)
    elif gate_padded:
        # No ragged tile, but some grid cells are pure padding: skip their compute.
        @pl.when(t < total_tiles)
        def _():
            accumulate(mask_rows=False)
    else:
        accumulate(mask_rows=False)


def information_maximization_loss(pred_prob, epsilon):
    """pred_prob: (B, C) float array of logits; epsilon: python/jnp scalar."""
    B, C = pred_prob.shape
    tune = _tuning_for_device()
    itemsize = jnp.dtype(pred_prob.dtype).itemsize

    tb = _choose_row_tile(B, C, itemsize, tune["tile_bytes"])
    total_tiles = pl.cdiv(B, tb)
    num_cores = max(1, min(tune["num_cores"], total_tiles))
    tiles_per_core = pl.cdiv(total_tiles, num_cores)
    last_tile = total_tiles - 1
    ragged = (B % tb) != 0
    gate_padded = (num_cores * tiles_per_core) != total_tiles

    kernel = functools.partial(
        _im_partials_kernel, batch=B, tiles_per_core=tiles_per_core,
        total_tiles=total_tiles, ragged=ragged, gate_padded=gate_padded)

    def x_index_map(c, i):
        # Clamp so padded grid cells never issue an out-of-bounds DMA; their
        # compute is skipped inside the kernel anyway.
        return (jnp.minimum(c * tiles_per_core + i, last_tile), 0)

    psum_parts, ent_parts = pl.pallas_call(
        kernel,
        grid=(num_cores, tiles_per_core),
        in_specs=[pl.BlockSpec((tb, C), x_index_map)],
        out_specs=(
            pl.BlockSpec((None, 1, C), lambda c, i: (c, 0, 0)),   # per-class prob sums
            pl.BlockSpec((None, 1, 1), lambda c, i: (c, 0, 0)),   # instance-entropy sums
        ),
        out_shape=(
            jax.ShapeDtypeStruct((num_cores, 1, C), jnp.float32),
            jax.ShapeDtypeStruct((num_cores, 1, 1), jnp.float32),
        ),
        compiler_params=pltpu.CompilerParams(
            dimension_semantics=("parallel", "arbitrary"),
            vmem_limit_bytes=tune["vmem_limit"]),
        cost_estimate=pl.CostEstimate(
            flops=8 * B * C,
            transcendentals=2 * B * C,
            bytes_accessed=B * C * itemsize + num_cores * (C + 1) * 4),
    )(pred_prob)

    # Tiny finalize epilogue in plain JAX (divide by the TRUE batch size B).
    ins_entropy = jnp.sum(ent_parts) / B
    msoftmax = jnp.sum(psum_parts, axis=0).reshape(C) / B
    class_entropy = jnp.sum(-msoftmax * jnp.log(msoftmax + epsilon))
    return ins_entropy - class_entropy


def _reference(pred_prob, epsilon):
    # Pure-JAX reference mirroring the PyTorch module.
    p = jax.nn.softmax(pred_prob.astype(jnp.float32), axis=1)
    ins = jnp.mean(jnp.sum(-p * jnp.log(p + 1e-5), axis=1))
    mp = jnp.mean(p, axis=0)
    cls = jnp.sum(-mp * jnp.log(mp + epsilon))
    return ins - cls


if __name__ == "__main__":
    key = jax.random.PRNGKey(0)
    B, C = 20, 128          # batch, num_classes (exercises full + ragged tile paths)
    pred_prob = jax.random.normal(key, (B, C), dtype=jnp.float32)
    epsilon = 1e-5

    loss = information_maximization_loss(pred_prob, epsilon)
    loss = jax.block_until_ready(loss)

    ref = _reference(pred_prob, epsilon)
    assert jnp.allclose(loss, ref, atol=1e-4, rtol=1e-4), (loss, ref)

    print("KERNEL_OK")
</pallas_src>

<mosaic_0001>
module attributes {stable_mosaic.version = 11 : i64} {
  func.func @_im_partials_kernel(%arg0: i32, %arg1: i32, %arg2: memref<16x128xf32, #tpu.memory_space<vmem>>, %arg3: memref<1x1x128xf32, #tpu.memory_space<vmem>>, %arg4: memref<1x1x1xf32, #tpu.memory_space<vmem>>) attributes {dimension_semantics = [#tpu.dimension_semantics<parallel>, #tpu.dimension_semantics<arbitrary>], iteration_bounds = array<i64: 1, 2>, scalar_prefetch = 0 : i64, scratch_operands = 0 : i64, tpu.core_type = #tpu.core_type<tc>, window_params = [{transform_indices = @transform_0, window_bounds = array<i64: 16, 128>}, {transform_indices = @transform_1, window_bounds = array<i64: 1, 1, 128>}, {transform_indices = @transform_2, window_bounds = array<i64: 1, 1, 1>}]} {
    %c2_i32 = arith.constant 2 : i32
    %0 = arith.muli %arg0, %c2_i32 : i32
    %1 = arith.addi %0, %arg1 : i32
    %c0_i32 = arith.constant 0 : i32
    %2 = arith.cmpi eq, %arg1, %c0_i32 : i32
    %3 = arith.extui %2 : i1 to i32
    %c0_i32_0 = arith.constant 0 : i32
    %4 = arith.cmpi ne, %3, %c0_i32_0 : i32
    scf.if %4 {
      %cst = arith.constant 0.000000e+00 : f32
      %11 = vector.broadcast %cst : f32 to vector<1x128xf32>
      %c0 = arith.constant 0 : index
      %c0_4 = arith.constant 0 : index
      %c0_5 = arith.constant 0 : index
      %12 = vector.load %arg3[%c0, %c0_4, %c0_5] : memref<1x1x128xf32, #tpu.memory_space<vmem>>, vector<1x1x128xf32>
      %13 = vector.shape_cast %12 : vector<1x1x128xf32> to vector<1x128xf32>
      %14 = vector.shape_cast %11 : vector<1x128xf32> to vector<1x1x128xf32>
      tpu.vector_store %arg3[%c0, %c0_4, %c0_5], %14 {strides = array<i32>} : memref<1x1x128xf32, #tpu.memory_space<vmem>>, vector<1x1x128xf32>,
      %cst_6 = arith.constant 0.000000e+00 : f32
      %15 = vector.broadcast %cst_6 : f32 to vector<1x1xf32>
      %c0_7 = arith.constant 0 : index
      %c0_8 = arith.constant 0 : index
      %c0_9 = arith.constant 0 : index
      %16 = vector.load %arg4[%c0_7, %c0_8, %c0_9] : memref<1x1x1xf32, #tpu.memory_space<vmem>>, vector<1x1x1xf32>
      %17 = vector.shape_cast %16 : vector<1x1x1xf32> to vector<1x1xf32>
      %18 = vector.shape_cast %15 : vector<1x1xf32> to vector<1x1x1xf32>
      tpu.vector_store %arg4[%c0_7, %c0_8, %c0_9], %18 {strides = array<i32>} : memref<1x1x1xf32, #tpu.memory_space<vmem>>, vector<1x1x1xf32>,
    } else {
    }
    %c1_i32 = arith.constant 1 : i32
    %5 = arith.cmpi slt, %1, %c1_i32 : i32
    %6 = arith.extui %5 : i1 to i32
    %c0_i32_1 = arith.constant 0 : i32
    %7 = arith.cmpi ne, %6, %c0_i32_1 : i32
    scf.if %7 {
      %c0 = arith.constant 0 : index
      %c0_4 = arith.constant 0 : index
      %11 = vector.load %arg2[%c0, %c0_4] : memref<16x128xf32, #tpu.memory_space<vmem>>, vector<16x128xf32>
      %cst = arith.constant dense<0xFF800000> : vector<16xf32>
      %12 = vector.multi_reduction <maximumf>, %11, %cst [1] : vector<16x128xf32> to vector<16xf32>
      %13 = vector.shape_cast %12 : vector<16xf32> to vector<16x1xf32>
      %14 = vector.broadcast %13 : vector<16x1xf32> to vector<16x128xf32>
      %15 = arith.subf %11, %14 : vector<16x128xf32>
      %16 = math.exp %15 : vector<16x128xf32>
      %cst_5 = arith.constant dense<0.000000e+00> : vector<16xf32>
      %17 = vector.multi_reduction <add>, %16, %cst_5 [1] : vector<16x128xf32> to vector<16xf32>
      %18 = vector.shape_cast %17 : vector<16xf32> to vector<16x1xf32>
      %19 = tpu.reciprocal %18 : vector<16x1xf32> -> vector<16x1xf32>
      %20 = vector.broadcast %19 : vector<16x1xf32> to vector<16x128xf32>
      %21 = arith.mulf %16, %20 : vector<16x128xf32>
      %cst_6 = arith.constant 9.99999974E-6 : f32
      %22 = vector.broadcast %cst_6 : f32 to vector<16x128xf32>
      %23 = arith.addf %21, %22 : vector<16x128xf32>
      %24 = math.log %23 : vector<16x128xf32>
      %25 = arith.mulf %21, %24 : vector<16x128xf32>
      %cst_7 = arith.constant dense<0.000000e+00> : vector<16xf32>
      %26 = vector.multi_reduction <add>, %25, %cst_7 [1] : vector<16x128xf32> to vector<16xf32>
      %27 = vector.shape_cast %26 : vector<16xf32> to vector<16x1xf32>
      %cst_8 = arith.constant 0.000000e+00 : f32
      %28 = vector.broadcast %cst_8 : f32 to vector<16x1xf32>
      %29 = arith.subf %28, %27 : vector<16x1xf32>
      %c0_9 = arith.constant 0 : index
      %c0_10 = arith.constant 0 : index
      %c0_11 = arith.constant 0 : index
      %30 = vector.load %arg3[%c0_9, %c0_10, %c0_11] : memref<1x1x128xf32, #tpu.memory_space<vmem>>, vector<1x1x128xf32>
      %31 = vector.shape_cast %30 : vector<1x1x128xf32> to vector<1x128xf32>
      %cst_12 = arith.constant dense<0.000000e+00> : vector<128xf32>
      %32 = vector.multi_reduction <add>, %21, %cst_12 [0] : vector<16x128xf32> to vector<128xf32>
      %33 = vector.shape_cast %32 : vector<128xf32> to vector<1x128xf32>
      %34 = arith.addf %31, %33 : vector<1x128xf32>
      %c0_13 = arith.constant 0 : index
      %c0_14 = arith.constant 0 : index
      %c0_15 = arith.constant 0 : index
      %35 = vector.load %arg3[%c0_13, %c0_14, %c0_15] : memref<1x1x128xf32, #tpu.memory_space<vmem>>, vector<1x1x128xf32>
      %36 = vector.shape_cast %35 : vector<1x1x128xf32> to vector<1x128xf32>
      %37 = vector.shape_cast %34 : vector<1x128xf32> to vector<1x1x128xf32>
      tpu.vector_store %arg3[%c0_13, %c0_14, %c0_15], %37 {strides = array<i32>} : memref<1x1x128xf32, #tpu.memory_space<vmem>>, vector<1x1x128xf32>,
      %c0_16 = arith.constant 0 : index
      %c0_17 = arith.constant 0 : index
      %c0_18 = arith.constant 0 : index
      %38 = vector.load %arg4[%c0_16, %c0_17, %c0_18] : memref<1x1x1xf32, #tpu.memory_space<vmem>>, vector<1x1x1xf32>
      %39 = vector.shape_cast %38 : vector<1x1x1xf32> to vector<1x1xf32>
      %cst_19 = arith.constant dense<0.000000e+00> : vector<1xf32>
      %40 = vector.multi_reduction <add>, %29, %cst_19 [0] : vector<16x1xf32> to vector<1xf32>
      %41 = vector.shape_cast %40 : vector<1xf32> to vector<1x1xf32>
      %42 = arith.addf %39, %41 : vector<1x1xf32>
      %c0_20 = arith.constant 0 : index
      %c0_21 = arith.constant 0 : index
      %c0_22 = arith.constant 0 : index
      %43 = vector.load %arg4[%c0_20, %c0_21, %c0_22] : memref<1x1x1xf32, #tpu.memory_space<vmem>>, vector<1x1x1xf32>
      %44 = vector.shape_cast %43 : vector<1x1x1xf32> to vector<1x1xf32>
      %45 = vector.shape_cast %42 : vector<1x1xf32> to vector<1x1x1xf32>
      tpu.vector_store %arg4[%c0_20, %c0_21, %c0_22], %45 {strides = array<i32>} : memref<1x1x1xf32, #tpu.memory_space<vmem>>, vector<1x1x1xf32>,
    } else {
    }
    %c1_i32_2 = arith.constant 1 : i32
    %8 = arith.cmpi eq, %1, %c1_i32_2 : i32
    %9 = arith.extui %8 : i1 to i32
    %c0_i32_3 = arith.constant 0 : i32
    %10 = arith.cmpi ne, %9, %c0_i32_3 : i32
    scf.if %10 {
      %c0 = arith.constant 0 : index
      %c0_4 = arith.constant 0 : index
      %11 = vector.load %arg2[%c0, %c0_4] : memref<16x128xf32, #tpu.memory_space<vmem>>, vector<16x128xf32>
      %c16_i32 = arith.constant 16 : i32
      %12 = arith.muli %1, %c16_i32 : i32
      %13 = tpu.iota {dimensions = array<i32: 0>} : vector<16x1xi32>
      %14 = vector.broadcast %12 : i32 to vector<16x1xi32>
      %15 = arith.addi %14, %13 : vector<16x1xi32>
      %c20_i32 = arith.constant 20 : i32
      %16 = vector.broadcast %c20_i32 : i32 to vector<16x1xi32>
      %17 = arith.cmpi slt, %15, %16 : vector<16x1xi32>
      %cst = arith.constant 0.000000e+00 : f32
      %18 = vector.shape_cast %17 : vector<16x1xi1> to vector<16x1xi1>
      %19 = vector.broadcast %18 : vector<16x1xi1> to vector<16x128xi1>
      %20 = vector.broadcast %cst : f32 to vector<16x128xf32>
      %21 = arith.select %19, %11, %20 : vector<16x128xi1>, vector<16x128xf32>
      %cst_5 = arith.constant dense<0xFF800000> : vector<16xf32>
      %22 = vector.multi_reduction <maximumf>, %21, %cst_5 [1] : vector<16x128xf32> to vector<16xf32>
      %23 = vector.shape_cast %22 : vector<16xf32> to vector<16x1xf32>
      %24 = vector.broadcast %23 : vector<16x1xf32> to vector<16x128xf32>
      %25 = arith.subf %21, %24 : vector<16x128xf32>
      %26 = math.exp %25 : vector<16x128xf32>
      %cst_6 = arith.constant dense<0.000000e+00> : vector<16xf32>
      %27 = vector.multi_reduction <add>, %26, %cst_6 [1] : vector<16x128xf32> to vector<16xf32>
      %28 = vector.shape_cast %27 : vector<16xf32> to vector<16x1xf32>
      %29 = tpu.reciprocal %28 : vector<16x1xf32> -> vector<16x1xf32>
      %30 = vector.broadcast %29 : vector<16x1xf32> to vector<16x128xf32>
      %31 = arith.mulf %26, %30 : vector<16x128xf32>
      %cst_7 = arith.constant 9.99999974E-6 : f32
      %32 = vector.broadcast %cst_7 : f32 to vector<16x128xf32>
      %33 = arith.addf %31, %32 : vector<16x128xf32>
      %34 = math.log %33 : vector<16x128xf32>
      %35 = arith.mulf %31, %34 : vector<16x128xf32>
      %cst_8 = arith.constant dense<0.000000e+00> : vector<16xf32>
      %36 = vector.multi_reduction <add>, %35, %cst_8 [1] : vector<16x128xf32> to vector<16xf32>
      %37 = vector.shape_cast %36 : vector<16xf32> to vector<16x1xf32>
      %cst_9 = arith.constant 0.000000e+00 : f32
      %38 = vector.broadcast %cst_9 : f32 to vector<16x1xf32>
      %39 = arith.subf %38, %37 : vector<16x1xf32>
      %40 = arith.extui %17 : vector<16x1xi1> to vector<16x1xi32>
      %41 = arith.sitofp %40 : vector<16x1xi32> to vector<16x1xf32>
      %42 = vector.broadcast %41 : vector<16x1xf32> to vector<16x128xf32>
      %43 = arith.mulf %31, %42 : vector<16x128xf32>
      %44 = arith.mulf %39, %41 : vector<16x1xf32>
      %c0_10 = arith.constant 0 : index
      %c0_11 = arith.constant 0 : index
      %c0_12 = arith.constant 0 : index
      %45 = vector.load %arg3[%c0_10, %c0_11, %c0_12] : memref<1x1x128xf32, #tpu.memory_space<vmem>>, vector<1x1x128xf32>
      %46 = vector.shape_cast %45 : vector<1x1x128xf32> to vector<1x128xf32>
      %cst_13 = arith.constant dense<0.000000e+00> : vector<128xf32>
      %47 = vector.multi_reduction <add>, %43, %cst_13 [0] : vector<16x128xf32> to vector<128xf32>
      %48 = vector.shape_cast %47 : vector<128xf32> to vector<1x128xf32>
      %49 = arith.addf %46, %48 : vector<1x128xf32>
      %c0_14 = arith.constant 0 : index
      %c0_15 = arith.constant 0 : index
      %c0_16 = arith.constant 0 : index
      %50 = vector.load %arg3[%c0_14, %c0_15, %c0_16] : memref<1x1x128xf32, #tpu.memory_space<vmem>>, vector<1x1x128xf32>
      %51 = vector.shape_cast %50 : vector<1x1x128xf32> to vector<1x128xf32>
      %52 = vector.shape_cast %49 : vector<1x128xf32> to vector<1x1x128xf32>
      tpu.vector_store %arg3[%c0_14, %c0_15, %c0_16], %52 {strides = array<i32>} : memref<1x1x128xf32, #tpu.memory_space<vmem>>, vector<1x1x128xf32>,
      %c0_17 = arith.constant 0 : index
      %c0_18 = arith.constant 0 : index
      %c0_19 = arith.constant 0 : index
      %53 = vector.load %arg4[%c0_17, %c0_18, %c0_19] : memref<1x1x1xf32, #tpu.memory_space<vmem>>, vector<1x1x1xf32>
      %54 = vector.shape_cast %53 : vector<1x1x1xf32> to vector<1x1xf32>
      %cst_20 = arith.constant dense<0.000000e+00> : vector<1xf32>
      %55 = vector.multi_reduction <add>, %44, %cst_20 [0] : vector<16x1xf32> to vector<1xf32>
      %56 = vector.shape_cast %55 : vector<1xf32> to vector<1x1xf32>
      %57 = arith.addf %54, %56 : vector<1x1xf32>
      %c0_21 = arith.constant 0 : index
      %c0_22 = arith.constant 0 : index
      %c0_23 = arith.constant 0 : index
      %58 = vector.load %arg4[%c0_21, %c0_22, %c0_23] : memref<1x1x1xf32, #tpu.memory_space<vmem>>, vector<1x1x1xf32>
      %59 = vector.shape_cast %58 : vector<1x1x1xf32> to vector<1x1xf32>
      %60 = vector.shape_cast %57 : vector<1x1xf32> to vector<1x1x1xf32>
      tpu.vector_store %arg4[%c0_21, %c0_22, %c0_23], %60 {strides = array<i32>} : memref<1x1x1xf32, #tpu.memory_space<vmem>>, vector<1x1x1xf32>,
    } else {
    }
    return
  }
  func.func @transform_0(%arg0: i32, %arg1: i32) -> (i32, i32) {
    %c2_i32 = arith.constant 2 : i32
    %0 = arith.muli %arg0, %c2_i32 : i32
    %1 = arith.addi %0, %arg1 : i32
    %c1_i32 = arith.constant 1 : i32
    %2 = arith.minsi %1, %c1_i32 : i32
    %c0_i32 = arith.constant 0 : i32
    %c0_i32_0 = arith.constant 0 : i32
    return %2, %c0_i32 : i32, i32
  }
  func.func @transform_1(%arg0: i32, %arg1: i32) -> (i32, i32, i32) {
    %c0_i32 = arith.constant 0 : i32
    %c0_i32_0 = arith.constant 0 : i32
    %c0_i32_1 = arith.constant 0 : i32
    return %arg0, %c0_i32, %c0_i32_0 : i32, i32, i32
  }
  func.func @transform_2(%arg0: i32, %arg1: i32) -> (i32, i32, i32) {
    %c0_i32 = arith.constant 0 : i32
    %c0_i32_0 = arith.constant 0 : i32
    %c0_i32_1 = arith.constant 0 : i32
    return %arg0, %c0_i32, %c0_i32_0 : i32, i32, i32
  }
}

</mosaic_0001>

<bundles_post_ra>
// kernel: tpu_custom_call.1
= control target key start
LH: loop header
LB: loop body
LE: loop exit
PB: predicated region body
PF: predicated region fallthrough
CT: control target
= control target key end

     0   :  { %8 = vsyncpa [#allocation3], 0  ;;  %s949_s0 = inlined_call_operand.hbm [shape: f32[20,128], index: 0, kind: input, shape index: {}]   ;;  %s950_s1 = inlined_call_operand.hbm [shape: f32[1,1,128], index: 1, kind: output, shape index: {0}]   ;;  %s951_s2 = inlined_call_operand.hbm [shape: f32[1,1,1], index: 2, kind: output, shape index: {1}]  }
   0x1   :  { %10 = vsyncpa [#allocation3 + $0x1], 0 }
   0x2   :  { %11 = vsyncpa [#allocation4], 0 }
   0x3   :  { %12 = vsyncpa [#allocation7], 0  ;;  %s790_s9 = smov 0   ;;  %s792_s10 = smov 0  }
   0x4   :  { %s794_s11 = smov 0   ;;  %s796_s12 = smov 0  }
   0x5   :  { %s798_s13 = smov 0   ;;  %s800_s14 = smov 0  }
   0x6 LB: > { %s27_s15 = sadd.s32 1, %s762_s13  ;;  %p36_p1 = scmp.lt.s32.totalorder %s762_s13, 1  ;;  %s766_s14 = sphi %s800_s14, %s18_s14   ;;  %s762_s13 = sphi %s798_s13, %s959_s13   ;;  %s758_s12 = sphi %s796_s12, %s958_s12   ;;  %s754_s11 = sphi %s794_s11, %s957_s11   ;;  %s750_s10 = sphi %s792_s10, %s956_s10   ;;  %s746_s9 = sphi %s790_s9, %s955_s9  }
   0x7   : > { %p28_p0 = scmp.ge.s32.totalorder %s27_s15, 2  ;;  %s497_s16 = sadd.s32 4294967295, %s766_s14  }
   0x8   : > { %p52_p2 = scmp.ne.s32.totalorder %s754_s11, %s750_s10  ;;  %p53_p4 = scmp.eq.s32.totalorder %s766_s14, 0 }
   0x9   : > { %s961_s15 = smov (%p28_p0, %s27_s15), 0  ;;  %p58_p5 = scmp.ne.s32.totalorder %s750_s10, %s746_s9 }
   0xa   : > { %s826_s17 = scalar_select %p36_p1, %s762_s13, 1 }
   0xb   : > { %p40_p3 = scmp.lt.s32.totalorder %s961_s15, 1  ;;  %p59_p6 = scmp.eq.s32.totalorder %s497_s16, 0 }
   0xc   : > { %p54_p7 = por %p53_p4, %p52_p2  ;;  %s45_s21 = sadd.s32 1, %s754_s11 }
   0xd   : > { %s41_s18 = scalar_select %p40_p3, %s961_s15, 1 }
   0xe   : > { %p834_p8 = por %p59_p6, %p58_p5  ;;  %p499_p10 = scmp.ge.s32.totalorder %s766_s14, 2 }
   0xf   : > { %s42_s20 = ssub.s32 %s826_s17, %s41_s18 }
  0x10   : > { %p43_p9 = scmp.eq.s32.totalorder %s42_s20, 0  ;;  %130 = sbr.rel (%p499_p10) target bundleno = 57 (0x39), region = 16 }
  0x12   : > { %s841_s22 = scalar_select %p43_p9, %s754_s11, %s45_s21  }
  0x15   : > { %133 = sbr.rel (!%p54_p7) target bundleno = 57 (0x39), region = 20  ;;  %s134_s23 = sand.u32 (%p54_p7), 1, %s754_s11  }
  0x16   : > { %s501_s24 = sshll.u32 (%p54_p7), %s826_s17, 1  ;;  %s500_s25 = sshll.u32 (%p54_p7), %s134_s23, 4 }
  0x17   : > { %s144_s26 = ssub.s32 (%p54_p7), 3, %s501_s24  ;;  %s849_s30 = scalar_lea.sflag (%p54_p7), [#allocation3], %s134_s23 }
  0x18   : > { %p145_p11 = scmp.lt.s32.totalorder (%p54_p7), %s144_s26, 2  ;;  %s138_s3 = scalar_lea.vmem (%p54_p7), [#allocation2], %s500_s25 }
  0x1a   : > { %s963_s26 = smov (!%p145_p11, %s144_s26), 2 }
  0x1b   : > { %s502_s27 = sshll.u32 %s963_s26, 3 }
  0x1c   : > { %s148_s28 = ssub.s32 16, %s502_s27 }
  0x1d   : > { %s149_s29 = sshll.u32 %s148_s28, 4 }
  0x1e   : > { %150 = vsyncadd %s849_s30, %s149_s29  ;;  %p852_p12 = scmp.ne.s32.totalorder %s502_s27, 0  ;;  %s521_s5 = sshll.u32 %s826_s17, 4 }
  0x1f   : > { %s153_s8 = scalar_lea.hbm %s949_s0, %s521_s5  ;;  %s860_s9 = sshll.u32 %s138_s3, 4  ;;  %s158_s9 = int_to_ptr.vmem [resolvable:$true] %s860_s9 }
  0x20   : > { %s155_s18 = sshll.u32 %s153_s8, 4  ;;  %s506_s20 = sshll.u32 %s963_s26, 7  ;;  %s863_s18 = int_to_ptr.hbm [resolvable:$true] %s155_s18 }
  0x21   : > { %s613_s21 = sshra.s32 %s863_s18, 4  ;;  %s615_s23 = sshrl.u32 %s506_s20, 4  ;;  %s614_s21 = int_to_ptr.hbm [resolvable:$true] %s613_s21 }
  0x22   : > { %s620_s24 = scalar_lea.hbm %s614_s21, %s615_s23  ;;  %s624_s27 = scalar_lea.hbm %s949_s0, 24 }
  0x23   : > { %p621_p13 = scmp.ne.s32.totalorder %s614_s21, %s620_s24  ;;  %p626_p2 = scmp.lt.s32.totalorder %s624_s27, %s620_s24 }
  0x25   : > { %p622_p0 = pnand %p621_p13, %p852_p12 }
  0x27   : > { %p623_p1 = pneg %p622_p0 }
  0x29   : > { %p628_p3 = pnand %p626_p2, %p623_p1 }
  0x2b   : > { %631 = shalt.err (!%p628_p3)
}
  0x2c   : > { %s632_s28 = sshra.s32 %s158_s9, 4  ;;  %s768_s3 = smov [#allocation2]   ;;  %s633_s28 = int_to_ptr.vmem [resolvable:$true] %s632_s28 }
  0x2d   : > { %s639_s29 = scalar_lea.vmem %s633_s28, %s615_s23  ;;  %s643_s5 = scalar_lea.vmem %s768_s3, 32 }
  0x2e   : > { %p640_p4 = scmp.ne.s32.totalorder %s633_s28, %s639_s29  ;;  %p645_p7 = scmp.lt.s32.totalorder %s643_s5, %s639_s29 }
  0x30   : > { %p641_p5 = pnand %p640_p4, %p852_p12 }
  0x32   : > { %p642_p6 = pneg %p641_p5 }
  0x34   : > { %p647_p9 = pnand %p645_p7, %p642_p6 }
  0x36   : > { %650 = shalt.err (!%p647_p9)
}
  0x37   : > { %s769_s6 = smov 128   ;;  %s770_s7 = smov 8  }
  0x38   : > { %163 = dma.hbm_to_vmem [thread:$0]  (%p852_p12), %s863_s18, %s506_s20, %s158_s9, %s849_s30, %s769_s6, %s769_s6, %s770_s7  }
  0x39 PF: > { %p507_p10 = scmp.ge.s32.totalorder %s766_s14, 1  ;;  %p165_p11 = scmp.lt.s32.totalorder %s766_s14, 3 }
  0x3b   : > { %p166_p13 = pnand %p507_p10, %p165_p11 }
  0x3c   : > { %s171_s8 = sand.u32 (!%p166_p13), 1, %s750_s10  }
  0x3d   : > { %169 = sbr.rel (%p166_p13) target bundleno = 948 (0x3b4), region = 24  ;;  %s508_s21 = sshll.u32 (!%p166_p13), %s171_s8, 4 }
  0x3e   : > { %s172_s23 = scalar_lea.sflag (!%p166_p13), [#allocation3], %s171_s8  ;;  %s889_s24 = scalar_lea.vmem (!%p166_p13), [#allocation2], %s508_s21 }
  0x42   : > { %733 = dma.done.wait (%p834_p8), %s172_s23, 256  }
  0x43   : > { %735 = vsyncadd (%p834_p8), %s172_s23, 4294967040  ;;  %p509_p12 = scmp.ne.s32.totalorder %s758_s12, 0 }
  0x45   : > { %206 = sbr.rel (%p509_p12) target bundleno = 77 (0x4d), region = 32 }
  0x4a   : > { %vm208_vm0 = vcmask 0   ;;  %v771_v0 = vmov 0.0  }
  0x4b   : > { %207 = vst [vmem:[#allocation5] sm:$0x1] %v771_v0 }
  0x4c   : > { %209 = vst.msk [vmem:[#allocation6] sm:$0x1] %vm208_vm0, %v771_v0 }
  0x4d PF: > { %p510_p0 = scmp.ge.s32.totalorder %s758_s12, 1 }
  0x4f   : > { %213 = sbr.rel (%p510_p0) target bundleno = 503 (0x1f7), region = 36 }
  0x54   : > { %v214_v1 = vld [vmem:[%s889_s24] sm:$0xff]  ;;  %v215_v2 = vld [vmem:[%s889_s24 + $0x8] sm:$0xff]  ;;  %vm293_vm9 = vcmask 0  }
  0x55   : > { %216 = vmax.xlane.f32.xlu0 %v214_v1  ;;  %v274_v49 = vld [vmem:[#allocation5] sm:$0x1]  ;;  %v284_v62 = vld [vmem:[#allocation6] sm:$0x1] }
  0x5d   : > { %218 = vmax.xlane.f32.xlu0 %v215_v2 }
  0xc8   : > { %v217_v3 = vpop.xlane.xlu0 %216 }
  0xc9   : > { %v220_v4 = vsub.f32 %v214_v1, %v217_v3 }
  0xcb   : > { %v222_v5 = vmul.f32 1.442695, %v220_v4 }
  0xcd   : > { %589 = vpow2.f32 %v222_v5 }
  0xd0   : > { %v219_v6 = vpop.xlane.xlu0 %218 }
  0xd1   : > { %v221_v7 = vsub.f32 %v215_v2, %v219_v6 }
  0xd3   : > { %v590_v8 = vpop.eup %589  ;;  %v224_v9 = vmul.f32 1.442695, %v221_v7 }
  0xd4   : > { %226 = vadd.xlane.f32.xlu1 %v590_v8 }
  0xd5   : > { %591 = vpow2.f32 %v224_v9 }
  0xdb   : > { %v592_v10 = vpop.eup %591 }
  0xdc   : > { %228 = vadd.xlane.f32.xlu1 %v592_v10 }
 0x147   : > { %v227_v11 = vpop.xlane.xlu1 %226 }
 0x148   : > { %593 = vrcp.f32 %v227_v11  ;;  %v241_v16 = vand.u32 2147483648, %v227_v11  ;;  %v239_v18 = vand.u32 2147483647, %v227_v11  ;;  %vm235_vm2 = vweird.f32 %v227_v11 }
 0x14a   : > { %v242_v21 = vor.u32 1.1754944e-38, %v241_v16  ;;  %vm240_vm4 = vcmp.eq.f32.partialorder %v239_v18, 8.507059e+37 }
 0x14e   : > { %v594_v12 = vpop.eup %593 }
 0x14f   : > { %v231_v13 = vmul.f32 %v594_v12, %v227_v11  ;;  %v229_v14 = vpop.xlane.xlu1 %228  ;;  %vm236_vm1 = vweird.f32 %v594_v12 }
 0x150   : > { %595 = vrcp.f32 %v229_v14  ;;  %vm237_vm3 = vmor %vm235_vm2, %vm236_vm1  ;;  %v255_v27 = vand.u32 2147483648, %v229_v14  ;;  %v253_v29 = vand.u32 2147483647, %v229_v14  ;;  %vm249_vm6 = vweird.f32 %v229_v14 }
 0x151   : > { %v232_v15 = vsub.f32 1.0, %v231_v13 }
 0x152   : > { %v256_v32 = vor.u32 1.1754944e-38, %v255_v27  ;;  %vm254_vm8 = vcmp.eq.f32.partialorder %v253_v29, 8.507059e+37 }
 0x153   : > { %v233_v17 = vmul.f32 %v594_v12, %v232_v15 }
 0x155   : > { %v234_v19 = vadd.f32 %v594_v12, %v233_v17 }
 0x156   : > { %v596_v20 = vpop.eup %595 }
 0x157   : > { %v245_v22 = vmul.f32 %v596_v20, %v229_v14  ;;  %v238_v23 = vsel %vm237_vm3, %v594_v12, %v234_v19  ;;  %vm250_vm5 = vweird.f32 %v596_v20 }
 0x158   : > { %v243_v24 = vsel %vm240_vm4, %v242_v21, %v238_v23  ;;  %vm251_vm7 = vmor %vm249_vm6, %vm250_vm5 }
 0x159   : > { %v246_v25 = vsub.f32 1.0, %v245_v22  ;;  %v258_v26 = vmul.f32 %v590_v8, %v243_v24 }
 0x15b   : > { %v247_v28 = vmul.f32 %v596_v20, %v246_v25  ;;  %v260_v30 = vadd.f32 1e-05, %v258_v26 }
 0x15d   : > { %v248_v31 = vadd.f32 %v596_v20, %v247_v28  ;;  %597 = vlog2.f32 %v260_v30 }
 0x15f   : > { %v252_v33 = vsel %vm251_vm7, %v596_v20, %v248_v31 }
 0x160   : > { %v257_v34 = vsel %vm254_vm8, %v256_v32, %v252_v33 }
 0x161   : > { %v259_v35 = vmul.f32 %v592_v10, %v257_v34 }
 0x163   : > { %v598_v36 = vpop.eup %597  ;;  %v261_v37 = vadd.f32 1e-05, %v259_v35  ;;  %v275_v38 = vadd.f32 %v259_v35, %v258_v26 }
 0x164   : > { %v263_v39 = vmul.f32 0.6931472, %v598_v36 }
 0x165   : > { %599 = vlog2.f32 %v261_v37  ;;  %v276_v40 = vrot.slane %v275_v38, 4 }
 0x166   : > { %v266_v41 = vmul.f32 %v263_v39, %v258_v26 }
 0x167   : > { %v277_v42 = vadd.f32 %v276_v40, %v275_v38 }
 0x168   : > { %268 = vadd.xlane.f32.xlu2 %v266_v41 }
 0x169   : > { %v278_v43 = vrot.slane %v277_v42, 2 }
 0x16b   : > { %v600_v44 = vpop.eup %599  ;;  %v279_v45 = vadd.f32 %v278_v43, %v277_v42 }
 0x16c   : > { %v265_v46 = vmul.f32 0.6931472, %v600_v44 }
 0x16d   : > { %v280_v47 = vrot.slane %v279_v45, 1 }
 0x16e   : > { %v267_v48 = vmul.f32 %v265_v46, %v259_v35 }
 0x16f   : > { %v281_v50 = vadd.f32 %v280_v47, %v279_v45 }
 0x170   : > { %270 = vadd.xlane.f32.xlu2 %v267_v48 }
 0x171   : > { %v282_v51 = vadd.f32 %v281_v50, %v274_v49 }
 0x173   : > { %283 = vst [vmem:[#allocation5] sm:$0x1] %v282_v51 }
 0x1db   : > { %v269_v52 = vpop.xlane.xlu2 %268 }
 0x1dc   : > { %v272_v54 = vsub.f32 0.0, %v269_v52 }
 0x1e3   : > { %v271_v53 = vpop.xlane.xlu2 %270 }
 0x1e4   : > { %v273_v55 = vsub.f32 0.0, %v271_v53 }
 0x1e6   : > { %v285_v56 = vadd.f32 %v273_v55, %v272_v54 }
 0x1e8   : > { %v286_v57 = vrot.slane %v285_v56, 4 }
 0x1ea   : > { %v287_v58 = vadd.f32 %v286_v57, %v285_v56 }
 0x1ec   : > { %v288_v59 = vrot.slane %v287_v58, 2 }
 0x1ee   : > { %v289_v60 = vadd.f32 %v288_v59, %v287_v58 }
 0x1f0   : > { %v290_v61 = vrot.slane %v289_v60, 1 }
 0x1f2   : > { %v291_v63 = vadd.f32 %v290_v61, %v289_v60 }
 0x1f4   : > { %v292_v0 = vadd.f32 %v291_v63, %v284_v62 }
 0x1f6   : > { %294 = vst.msk [vmem:[#allocation6] sm:$0x1] %vm293_vm9, %v292_v0 }
 0x1f7 PF: > { %p511_p8 = scmp.ne.s32.totalorder %s758_s12, 1 }
 0x1f8   : > { %s512_s19 = sshll.u32 (!%p511_p8), %s758_s12, 4 }
 0x1f9   : > { %298 = sbr.rel (%p511_p8) target bundleno = 938 (0x3aa), region = 40 }
 0x1fe   : > { %v302_v1 = vlaneseq  ;;  %v305_v2 = vstv %s512_s19  ;;  %v299_v4 = vld [vmem:[%s889_s24] sm:$0xff]  ;;  %v300_v9 = vld [vmem:[%s889_s24 + $0x8] sm:$0xff]  ;;  %v772_v42 = vmov 0.0   ;;  %vm399_vm4 = vcmask 0  }
 0x1ff   : > { %v380_v62 = vld [vmem:[#allocation5] sm:$0x1] }
 0x200   : > { %v303_v3 = vshrl.u32 %v302_v1, 7 }
 0x202   : > { %v306_v5 = vadd.s32 %v305_v2, %v303_v3  ;;  %v304_v6 = vadd.s32 8, %v303_v3 }
 0x204   : > { %vm308_vm10 = vcmp.lt.s32.totalorder %v306_v5, 20  ;;  %v307_v7 = vadd.s32 %v305_v2, %v304_v6 }
 0x205   : > { %v314_v8 = vsel %vm308_vm10, %v299_v4, 0.0  ;;  %v513_v43 = vsel %vm308_vm10, 1.0, %v772_v42 }
 0x206   : > { %316 = vmax.xlane.f32.xlu0 %v314_v8  ;;  %vm309_vm11 = vcmp.lt.s32.totalorder %v307_v7, 20 }
 0x207   : > { %v315_v10 = vsel %vm309_vm11, %v300_v9, 0.0  ;;  %v514_v44 = vsel %vm309_vm11, 1.0, %v772_v42 }
 0x20e   : > { %318 = vmax.xlane.f32.xlu0 %v315_v10 }
 0x279   : > { %v317_v11 = vpop.xlane.xlu0 %316 }
 0x27a   : > { %v320_v12 = vsub.f32 %v314_v8, %v317_v11 }
 0x27c   : > { %v322_v13 = vmul.f32 1.442695, %v320_v12 }
 0x27e   : > { %601 = vpow2.f32 %v322_v13  ;;  %v390_v13 = vld [vmem:[#allocation6] sm:$0x1] }
 0x281   : > { %v319_v14 = vpop.xlane.xlu0 %318 }
 0x282   : > { %v321_v15 = vsub.f32 %v315_v10, %v319_v14 }
 0x284   : > { %v602_v16 = vpop.eup %601  ;;  %v324_v17 = vmul.f32 1.442695, %v321_v15 }
 0x285   : > { %326 = vadd.xlane.f32.xlu1 %v602_v16 }
 0x286   : > { %603 = vpow2.f32 %v324_v17 }
 0x28c   : > { %v604_v18 = vpop.eup %603 }
 0x28d   : > { %328 = vadd.xlane.f32.xlu1 %v604_v18 }
 0x2f8   : > { %v327_v19 = vpop.xlane.xlu1 %326 }
 0x2f9   : > { %605 = vrcp.f32 %v327_v19  ;;  %v341_v24 = vand.u32 2147483648, %v327_v19  ;;  %v339_v26 = vand.u32 2147483647, %v327_v19  ;;  %vm335_vm13 = vweird.f32 %v327_v19 }
 0x2fb   : > { %v342_v29 = vor.u32 1.1754944e-38, %v341_v24  ;;  %vm340_vm15 = vcmp.eq.f32.partialorder %v339_v26, 8.507059e+37 }
 0x2ff   : > { %v606_v20 = vpop.eup %605 }
 0x300   : > { %v331_v21 = vmul.f32 %v606_v20, %v327_v19  ;;  %v329_v22 = vpop.xlane.xlu1 %328  ;;  %vm336_vm12 = vweird.f32 %v606_v20 }
 0x301   : > { %607 = vrcp.f32 %v329_v22  ;;  %vm337_vm14 = vmor %vm335_vm13, %vm336_vm12  ;;  %v355_v35 = vand.u32 2147483648, %v329_v22  ;;  %v353_v37 = vand.u32 2147483647, %v329_v22  ;;  %vm349_vm1 = vweird.f32 %v329_v22 }
 0x302   : > { %v332_v23 = vsub.f32 1.0, %v331_v21 }
 0x303   : > { %v356_v40 = vor.u32 1.1754944e-38, %v355_v35  ;;  %vm354_vm3 = vcmp.eq.f32.partialorder %v353_v37, 8.507059e+37 }
 0x304   : > { %v333_v25 = vmul.f32 %v606_v20, %v332_v23 }
 0x306   : > { %v334_v27 = vadd.f32 %v606_v20, %v333_v25 }
 0x307   : > { %v608_v28 = vpop.eup %607 }
 0x308   : > { %v345_v30 = vmul.f32 %v608_v28, %v329_v22  ;;  %v338_v31 = vsel %vm337_vm14, %v606_v20, %v334_v27  ;;  %vm350_vm0 = vweird.f32 %v608_v28 }
 0x309   : > { %v343_v32 = vsel %vm340_vm15, %v342_v29, %v338_v31  ;;  %vm351_vm2 = vmor %vm349_vm1, %vm350_vm0 }
 0x30a   : > { %v346_v33 = vsub.f32 1.0, %v345_v30  ;;  %v358_v34 = vmul.f32 %v602_v16, %v343_v32 }
 0x30c   : > { %v347_v36 = vmul.f32 %v608_v28, %v346_v33  ;;  %v360_v38 = vadd.f32 1e-05, %v358_v34  ;;  %v376_v48 = vmul.f32 %v513_v43, %v358_v34 }
 0x30e   : > { %v348_v39 = vadd.f32 %v608_v28, %v347_v36  ;;  %609 = vlog2.f32 %v360_v38 }
 0x310   : > { %v352_v41 = vsel %vm351_vm2, %v608_v28, %v348_v39 }
 0x311   : > { %v357_v45 = vsel %vm354_vm3, %v356_v40, %v352_v41 }
 0x312   : > { %v359_v46 = vmul.f32 %v604_v18, %v357_v45 }
 0x314   : > { %v610_v47 = vpop.eup %609  ;;  %v361_v49 = vadd.f32 1e-05, %v359_v46  ;;  %v377_v50 = vmul.f32 %v514_v44, %v359_v46 }
 0x315   : > { %v363_v51 = vmul.f32 0.6931472, %v610_v47 }
 0x316   : > { %611 = vlog2.f32 %v361_v49  ;;  %v381_v52 = vadd.f32 %v377_v50, %v376_v48 }
 0x317   : > { %v366_v53 = vmul.f32 %v363_v51, %v358_v34 }
 0x318   : > { %v382_v54 = vrot.slane %v381_v52, 4 }
 0x319   : > { %368 = vadd.xlane.f32.xlu2 %v366_v53 }
 0x31a   : > { %v383_v55 = vadd.f32 %v382_v54, %v381_v52 }
 0x31c   : > { %v612_v56 = vpop.eup %611  ;;  %v384_v57 = vrot.slane %v383_v55, 2 }
 0x31d   : > { %v365_v58 = vmul.f32 0.6931472, %v612_v56 }
 0x31e   : > { %v385_v59 = vadd.f32 %v384_v57, %v383_v55 }
 0x31f   : > { %v367_v60 = vmul.f32 %v365_v58, %v359_v46 }
 0x320   : > { %v386_v61 = vrot.slane %v385_v59, 1 }
 0x321   : > { %370 = vadd.xlane.f32.xlu2 %v367_v60 }
 0x322   : > { %v387_v63 = vadd.f32 %v386_v61, %v385_v59 }
 0x324   : > { %v388_v0 = vadd.f32 %v387_v63, %v380_v62 }
 0x326   : > { %389 = vst [vmem:[#allocation5] sm:$0x1] %v388_v0 }
 0x38c   : > { %v369_v1 = vpop.xlane.xlu2 %368 }
 0x38d   : > { %v372_v2 = vsub.f32 0.0, %v369_v1 }
 0x38f   : > { %v378_v5 = vmul.f32 %v513_v43, %v372_v2 }
 0x394   : > { %v371_v3 = vpop.xlane.xlu2 %370 }
 0x395   : > { %v373_v4 = vsub.f32 0.0, %v371_v3 }
 0x397   : > { %v379_v6 = vmul.f32 %v514_v44, %v373_v4 }
 0x399   : > { %v391_v7 = vadd.f32 %v379_v6, %v378_v5 }
 0x39b   : > { %v392_v8 = vrot.slane %v391_v7, 4 }
 0x39d   : > { %v393_v9 = vadd.f32 %v392_v8, %v391_v7 }
 0x39f   : > { %v394_v10 = vrot.slane %v393_v9, 2 }
 0x3a1   : > { %v395_v11 = vadd.f32 %v394_v10, %v393_v9 }
 0x3a3   : > { %v396_v12 = vrot.slane %v395_v11, 1 }
 0x3a5   : > { %v397_v14 = vadd.f32 %v396_v12, %v395_v11 }
 0x3a7   : > { %v398_v15 = vadd.f32 %v397_v14, %v390_v13 }
 0x3a9   : > { %400 = vst.msk [vmem:[#allocation6] sm:$0x1] %vm399_vm4, %v398_v15 }
 0x3aa PF: > { %p909_p1 = scmp.eq.s32.totalorder %s497_s16, 1  ;;  %s410_s4 = sshll.u32 %s950_s1, 4  ;;  %s411_s4 = int_to_ptr.hbm [resolvable:$true] %s410_s4 }
 0x3ab   : > { %s773_s9 = smov [#allocation5]   ;;  %s774_s20 = smov [#allocation6]  }
 0x3ac   : > { %s408_s18 = sshll.u32 %s773_s9, 4  ;;  %s421_s17 = sshll.u32 %s774_s20, 4  ;;  %s409_s18 = int_to_ptr.vmem [resolvable:$true] %s408_s18  ;;  %s422_s17 = int_to_ptr.vmem [resolvable:$true] %s421_s17 }
 0x3ad   : > { %524 = dma.vmem_to_hbm [thread:$0]  (%p909_p1), %s409_s18, 16, %s411_s4, [#allocation4]  }
 0x3ae   : > { %s423_s27 = sshll.u32 %s951_s2, 4  ;;  %s424_s27 = int_to_ptr.hbm [resolvable:$true] %s423_s27 }
 0x3af   : > { %526 = dma.vmem_to_hbm [thread:$0]  (%p909_p1), %s422_s17, 16, %s424_s27, [#allocation7]  }
 0x3b0   : > { %737 = dma.done.wait (%p909_p1), [#allocation4], 16  }
 0x3b1   : > { %739 = vsyncadd (%p909_p1), [#allocation4], 4294967280 }
 0x3b2   : > { %741 = dma.done.wait (%p909_p1), [#allocation7], 16  }
 0x3b3   : > { %743 = vsyncadd (%p909_p1), [#allocation7], 4294967280 }
 0x3b4 PF: > { %s18_s14 = sadd.s32 1, %s766_s14   ;;  %s955_s9 = smov %s750_s10 }
 0x3b5   : > { %p15_p2 = scmp.ge.s32.totalorder %s18_s14, 4   ;;  %s956_s10 = smov %s754_s11 }
 0x3b6   : > { %s957_s11 = smov %s841_s22  ;;  %s958_s12 = smov %s762_s13 }
 0x3b7   : > { %s959_s13 = smov %s961_s15  ;;  %17 = sbr.rel (!%p15_p2) target bundleno = 6 (0x6), region = 83 }
 0x3bc   :  { %442 = vsyncpa [#allocation3], 1 }
 0x3bd   :  { %444 = vsyncpa [#allocation3 + $0x1], 1 }
 0x3be   :  { %445 = vsyncpa [#allocation4], 1 }
 0x3bf   :  { %447 = vsyncpa [#allocation4 + $0x1], 1 }
 0x3c0   :  { %448 = vsyncpa [#allocation7], 1 }

</bundles_post_ra>
